<compile_context>
chip_gen: v6e
topology: v6e:2x2x1
jax: 0.10.0
libtpu: 0.0.40
codegen_flags: <defaults>
</compile_context>

<pallas_src>
import jax
import jax.numpy as jnp
from jax.experimental import pallas as pl
from jax.experimental.pallas import tpu as pltpu

BN_EPS = 1e-5


def _round_up(n, m):
    return ((n + m - 1) // m) * m


def _mlp_kernel(x_ref,
                w1_ref, b1_ref,
                w2_ref, b2_ref,
                w3_ref, b3_ref,
                o_ref):
    # x tile: [TILE_B, 8] f32 -> bf16 operands for the MXU.
    x_bf = x_ref[...].astype(jnp.bfloat16)

    # fc1 (feature-major): [20, 8] x [TILE_B, 8]^T -> [20, TILE_B], f32 accum.
    h1 = jax.lax.dot_general(
        w1_ref[...], x_bf, (((1,), (1,)), ((), ())),
        preferred_element_type=jnp.float32)
    h1 = jnp.maximum(h1 + b1_ref[...], 0.0)          # ReLU (bias lane-broadcast)
    # BatchNorm1d(20) eval affine is folded into w2/b2.
    # drop1: identity in eval mode.
    # TODO(synk): training-mode dropout / BN batch-stat update not emitted.

    # fc2 (+ folded BN): [40, 20] x [20, TILE_B] -> [40, TILE_B]
    h2 = jnp.dot(w2_ref[...], h1.astype(jnp.bfloat16),
                 preferred_element_type=jnp.float32)
    h2 = jnp.maximum(h2 + b2_ref[...], 0.0)
    # drop2: identity in eval mode.

    # output head: [3, 40] x [40, TILE_B] -> [3, TILE_B]  (lane-dense store)
    o_ref[...] = jnp.dot(w3_ref[...], h2.astype(jnp.bfloat16),
                         preferred_element_type=jnp.float32) + b3_ref[...]


def classification_model_forward(x, kparams, *, tile_b=8192):
    """x: [B, 8] float32. kparams: see prepare_kernel_params. Returns [B, 3] f32."""
    B = x.shape[0]
    # Lane-dense output needs TILE_B % 128 == 0; clamp for tiny batches.
    tb = int(min(_round_up(max(int(tile_b), 1), 128),
                 _round_up(max(B, 1), 128)))
    Bp = _round_up(B, tb)
    x_p = jnp.pad(x, ((0, Bp - B), (0, 0))) if Bp != B else x

    def const(shape):
        # Resident parameter block: DMA'd once, constant across grid steps.
        return pl.BlockSpec(shape, lambda i: (0, 0))

    out_t = pl.pallas_call(
        _mlp_kernel,
        out_shape=jax.ShapeDtypeStruct((3, Bp), jnp.float32),
        grid_spec=pltpu.PrefetchScalarGridSpec(
            num_scalar_prefetch=0,
            grid=(Bp // tb,),
            in_specs=[
                pl.BlockSpec((tb, 8), lambda i: (i, 0)),   # x, tiled over batch
                const((20, 8)), const((20, 1)),            # fc1
                const((40, 20)), const((40, 1)),           # fc2 (BN folded)
                const((3, 40)), const((3, 1)),             # output head
            ],
            out_specs=pl.BlockSpec((3, tb), lambda i: (0, i)),
        ),
        compiler_params=pltpu.CompilerParams(
            dimension_semantics=("parallel",),
            vmem_limit_bytes=32 * 1024 * 1024,
        ),
    )(x_p, kparams["w1"], kparams["b1"], kparams["w2"], kparams["b2"],
      kparams["w3"], kparams["b3"])

    # [3, Bp] -> [B, 3]
    return out_t.T[:B]


def init_params(key):
    """PyTorch-equivalent parameters. Linear weight stored as [in, out]
    (transpose of torch's [out, in]); biases/BN params as [1, F] rows."""
    ks = jax.random.split(key, 6)

    def linear(kw, kb, fan_in, fan_out):
        bound = 1.0 / jnp.sqrt(jnp.float32(fan_in))
        w = jax.random.uniform(kw, (fan_in, fan_out), jnp.float32, -bound, bound)
        b = jax.random.uniform(kb, (1, fan_out), jnp.float32, -bound, bound)
        return w, b

    w1, b1 = linear(ks[0], ks[1], 8, 20)
    w2, b2 = linear(ks[2], ks[3], 20, 40)
    w3, b3 = linear(ks[4], ks[5], 40, 3)

    # BatchNorm1d(20) defaults: gamma=1, beta=0, running_mean=0, running_var=1.
    gamma1 = jnp.ones((1, 20), jnp.float32)
    beta1 = jnp.zeros((1, 20), jnp.float32)
    mean1 = jnp.zeros((1, 20), jnp.float32)
    var1 = jnp.ones((1, 20), jnp.float32)

    return dict(w1=w1, b1=b1, gamma1=gamma1, beta1=beta1, mean1=mean1, var1=var1,
                w2=w2, b2=b2, w3=w3, b3=b3)


def prepare_kernel_params(p):
    """Fold eval-mode BN into fc2, transpose to feature-major [out, in],
    cast matmul operands to bf16 (biases stay f32 column vectors)."""
    a = p["gamma1"] * jax.lax.rsqrt(p["var1"] + BN_EPS)       # [1, 20]
    c = p["beta1"] - p["mean1"] * a                           # [1, 20]
    w2_folded = p["w2"] * a.reshape(-1, 1)                    # scale rows of [20, 40]
    b2_folded = p["b2"] + c @ p["w2"]                         # [1, 40]
    return dict(
        w1=p["w1"].T.astype(jnp.bfloat16),                    # [20, 8]
        b1=p["b1"].T.astype(jnp.float32),                     # [20, 1]
        w2=w2_folded.T.astype(jnp.bfloat16),                  # [40, 20]
        b2=b2_folded.T.astype(jnp.float32),                   # [40, 1]
        w3=p["w3"].T.astype(jnp.bfloat16),                    # [3, 40]
        b3=p["b3"].T.astype(jnp.float32),                     # [3, 1]
    )


def _reference_forward(x, p):
    """Pure-JAX f32 reference with unfolded BN (eval semantics)."""
    h1 = jnp.maximum(x @ p["w1"] + p["b1"], 0.0)
    h1 = (h1 - p["mean1"]) * jax.lax.rsqrt(p["var1"] + BN_EPS) * p["gamma1"] + p["beta1"]
    h2 = jnp.maximum(h1 @ p["w2"] + p["b2"], 0.0)
    return h2 @ p["w3"] + p["b3"]


if __name__ == "__main__":
    key = jax.random.PRNGKey(0)
    k_x, k_p = jax.random.split(key)

    # Small demo batch; tile_b=128 exercises a multi-step grid (3 tiles) plus
    # batch padding/trimming. Production use: default tile_b=8192.
    B = 300
    x = jax.random.normal(k_x, (B, 8), jnp.float32)
    params = init_params(k_p)
    kparams = prepare_kernel_params(params)

    out = classification_model_forward(x, kparams, tile_b=128)
    out = jax.block_until_ready(out)

    ref = _reference_forward(x, params)
    assert out.shape == (B, 3)
    # Tolerance relaxed for bf16 matmul operands (f32 accumulation).
    assert jnp.allclose(out, ref, atol=5e-2, rtol=5e-2), \
        f"max abs err {jnp.max(jnp.abs(out - ref))}"

    print("KERNEL_OK")
</pallas_src>

<mosaic_0001>
module attributes {stable_mosaic.version = 11 : i64} {
  func.func @_mlp_kernel(%arg0: i32, %arg1: memref<128x8xf32, #tpu.memory_space<vmem>>, %arg2: memref<20x8xbf16, #tpu.memory_space<vmem>>, %arg3: memref<20x1xf32, #tpu.memory_space<vmem>>, %arg4: memref<40x20xbf16, #tpu.memory_space<vmem>>, %arg5: memref<40x1xf32, #tpu.memory_space<vmem>>, %arg6: memref<3x40xbf16, #tpu.memory_space<vmem>>, %arg7: memref<3x1xf32, #tpu.memory_space<vmem>>, %arg8: memref<3x128xf32, #tpu.memory_space<vmem>>) attributes {dimension_semantics = [#tpu.dimension_semantics<parallel>], iteration_bounds = array<i64: 3>, scalar_prefetch = 0 : i64, scratch_operands = 0 : i64, tpu.core_type = #tpu.core_type<tc>, window_params = [{transform_indices = @transform_0, window_bounds = array<i64: 128, 8>}, {pipeline_mode = #tpu.pipeline_mode<synchronous>, transform_indices = @transform_1, window_bounds = array<i64: 20, 8>}, {pipeline_mode = #tpu.pipeline_mode<synchronous>, transform_indices = @transform_2, window_bounds = array<i64: 20, 1>}, {pipeline_mode = #tpu.pipeline_mode<synchronous>, transform_indices = @transform_3, window_bounds = array<i64: 40, 20>}, {pipeline_mode = #tpu.pipeline_mode<synchronous>, transform_indices = @transform_4, window_bounds = array<i64: 40, 1>}, {pipeline_mode = #tpu.pipeline_mode<synchronous>, transform_indices = @transform_5, window_bounds = array<i64: 3, 40>}, {pipeline_mode = #tpu.pipeline_mode<synchronous>, transform_indices = @transform_6, window_bounds = array<i64: 3, 1>}, {transform_indices = @transform_7, window_bounds = array<i64: 3, 128>}]} {
    %c0 = arith.constant 0 : index
    %c0_0 = arith.constant 0 : index
    %0 = vector.load %arg1[%c0, %c0_0] : memref<128x8xf32, #tpu.memory_space<vmem>>, vector<128x8xf32>
    %1 = arith.truncf %0 : vector<128x8xf32> to vector<128x8xbf16>
    %c0_1 = arith.constant 0 : index
    %c0_2 = arith.constant 0 : index
    %2 = vector.load %arg2[%c0_1, %c0_2] : memref<20x8xbf16, #tpu.memory_space<vmem>>, vector<20x8xbf16>
    %cst = arith.constant dense<0.000000e+00> : vector<20x128xf32>
    %3 = tpu.matmul %2, %1, %cst {dimension_numbers = #tpu.dot_dimension_numbers<[1], [1], [0], [0], [0, 0, 1, 0], [], []>} : vector<20x8xbf16>, vector<128x8xbf16>, vector<20x128xf32> -> vector<20x128xf32>
    %c0_3 = arith.constant 0 : index
    %c0_4 = arith.constant 0 : index
    %4 = vector.load %arg3[%c0_3, %c0_4] : memref<20x1xf32, #tpu.memory_space<vmem>>, vector<20x1xf32>
    %5 = vector.broadcast %4 : vector<20x1xf32> to vector<20x128xf32>
    %6 = arith.addf %3, %5 : vector<20x128xf32>
    %cst_5 = arith.constant 0.000000e+00 : f32
    %7 = vector.broadcast %cst_5 : f32 to vector<20x128xf32>
    %8 = arith.maximumf %6, %7 : vector<20x128xf32>
    %c0_6 = arith.constant 0 : index
    %c0_7 = arith.constant 0 : index
    %9 = vector.load %arg4[%c0_6, %c0_7] : memref<40x20xbf16, #tpu.memory_space<vmem>>, vector<40x20xbf16>
    %10 = arith.truncf %8 : vector<20x128xf32> to vector<20x128xbf16>
    %cst_8 = arith.constant dense<0.000000e+00> : vector<40x128xf32>
    %11 = tpu.matmul %9, %10, %cst_8 {dimension_numbers = #tpu.dot_dimension_numbers<[1], [0], [0], [1], [0, 0, 1, 1], [], []>} : vector<40x20xbf16>, vector<20x128xbf16>, vector<40x128xf32> -> vector<40x128xf32>
    %c0_9 = arith.constant 0 : index
    %c0_10 = arith.constant 0 : index
    %12 = vector.load %arg5[%c0_9, %c0_10] : memref<40x1xf32, #tpu.memory_space<vmem>>, vector<40x1xf32>
    %13 = vector.broadcast %12 : vector<40x1xf32> to vector<40x128xf32>
    %14 = arith.addf %11, %13 : vector<40x128xf32>
    %cst_11 = arith.constant 0.000000e+00 : f32
    %15 = vector.broadcast %cst_11 : f32 to vector<40x128xf32>
    %16 = arith.maximumf %14, %15 : vector<40x128xf32>
    %c0_12 = arith.constant 0 : index
    %c0_13 = arith.constant 0 : index
    %17 = vector.load %arg6[%c0_12, %c0_13] : memref<3x40xbf16, #tpu.memory_space<vmem>>, vector<3x40xbf16>
    %18 = arith.truncf %16 : vector<40x128xf32> to vector<40x128xbf16>
    %cst_14 = arith.constant dense<0.000000e+00> : vector<3x128xf32>
    %19 = tpu.matmul %17, %18, %cst_14 {dimension_numbers = #tpu.dot_dimension_numbers<[1], [0], [0], [1], [0, 0, 1, 1], [], []>} : vector<3x40xbf16>, vector<40x128xbf16>, vector<3x128xf32> -> vector<3x128xf32>
    %c0_15 = arith.constant 0 : index
    %c0_16 = arith.constant 0 : index
    %20 = vector.load %arg7[%c0_15, %c0_16] : memref<3x1xf32, #tpu.memory_space<vmem>>, vector<3x1xf32>
    %21 = vector.broadcast %20 : vector<3x1xf32> to vector<3x128xf32>
    %22 = arith.addf %19, %21 : vector<3x128xf32>
    %c0_17 = arith.constant 0 : index
    %c0_18 = arith.constant 0 : index
    %23 = vector.load %arg8[%c0_17, %c0_18] : memref<3x128xf32, #tpu.memory_space<vmem>>, vector<3x128xf32>
    tpu.vector_store %arg8[%c0_17, %c0_18], %22 {strides = array<i32>} : memref<3x128xf32, #tpu.memory_space<vmem>>, vector<3x128xf32>,
    return
  }
  func.func @transform_0(%arg0: i32) -> (i32, i32) {
    %c0_i32 = arith.constant 0 : i32
    %c0_i32_0 = arith.constant 0 : i32
    return %arg0, %c0_i32 : i32, i32
  }
  func.func @transform_1(%arg0: i32) -> (i32, i32) {
    %c0_i32 = arith.constant 0 : i32
    %c0_i32_0 = arith.constant 0 : i32
    %c0_i32_1 = arith.constant 0 : i32
    return %c0_i32, %c0_i32_0 : i32, i32
  }
  func.func @transform_2(%arg0: i32) -> (i32, i32) {
    %c0_i32 = arith.constant 0 : i32
    %c0_i32_0 = arith.constant 0 : i32
    %c0_i32_1 = arith.constant 0 : i32
    return %c0_i32, %c0_i32_0 : i32, i32
  }
  func.func @transform_3(%arg0: i32) -> (i32, i32) {
    %c0_i32 = arith.constant 0 : i32
    %c0_i32_0 = arith.constant 0 : i32
    %c0_i32_1 = arith.constant 0 : i32
    return %c0_i32, %c0_i32_0 : i32, i32
  }
  func.func @transform_4(%arg0: i32) -> (i32, i32) {
    %c0_i32 = arith.constant 0 : i32
    %c0_i32_0 = arith.constant 0 : i32
    %c0_i32_1 = arith.constant 0 : i32
    return %c0_i32, %c0_i32_0 : i32, i32
  }
  func.func @transform_5(%arg0: i32) -> (i32, i32) {
    %c0_i32 = arith.constant 0 : i32
    %c0_i32_0 = arith.constant 0 : i32
    %c0_i32_1 = arith.constant 0 : i32
    return %c0_i32, %c0_i32_0 : i32, i32
  }
  func.func @transform_6(%arg0: i32) -> (i32, i32) {
    %c0_i32 = arith.constant 0 : i32
    %c0_i32_0 = arith.constant 0 : i32
    %c0_i32_1 = arith.constant 0 : i32
    return %c0_i32, %c0_i32_0 : i32, i32
  }
  func.func @transform_7(%arg0: i32) -> (i32, i32) {
    %c0_i32 = arith.constant 0 : i32
    %c0_i32_0 = arith.constant 0 : i32
    return %c0_i32, %arg0 : i32, i32
  }
}

</mosaic_0001>

<bundles_post_ra>
// kernel: tpu_custom_call.1
= control target key start
LH: loop header
LB: loop body
LE: loop exit
PB: predicated region body
PF: predicated region fallthrough
CT: control target
= control target key end

     0   :  { %12 = vsyncpa [#allocation3], 0  ;;  %s1114_s0 = inlined_call_operand.vmem [shape: f32[384,8], index: 0, kind: input, shape index: {}]   ;;  %s1115_s1 = inlined_call_operand.vmem [shape: bf16[20,8], index: 1, kind: input, shape index: {}]   ;;  %s1116_s2 = inlined_call_operand.vmem [shape: f32[20,1], index: 2, kind: input, shape index: {}]   ;;  %s1117_s3 = inlined_call_operand.vmem [shape: bf16[40,20], index: 3, kind: input, shape index: {}]   ;;  %s1118_s4 = inlined_call_operand.vmem [shape: f32[40,1], index: 4, kind: input, shape index: {}]   ;;  %s1119_s5 = inlined_call_operand.vmem [shape: bf16[3,40], index: 5, kind: input, shape index: {}]   ;;  %s1120_s6 = inlined_call_operand.vmem [shape: f32[3,1], index: 6, kind: input, shape index: {}]   ;;  %s1121_s7 = inlined_call_operand.hbm [shape: f32[3,384], index: 7, kind: output, shape index: {}]  }
   0x1   :  { %14 = vsyncpa [#allocation3 + $0x1], 0  ;;  %s922_s24 = smov 0   ;;  %s924_s25 = smov 0  }
   0x2   :  { %s926_s26 = smov 0   ;;  %s928_s27 = smov 0  }
   0x3 LB: > { %s943_s28 = sadd.s32 4294967295, %s876_s27   ;;  %s672_s29 = sadd.s32 4294967294, %s876_s27   ;;  %s876_s27 = sphi %s928_s27, %s1127_s27   ;;  %s872_s26 = sphi %s926_s26, %s1126_s26   ;;  %s868_s25 = sphi %s924_s25, %s1125_s25   ;;  %s864_s24 = sphi %s922_s24, %s1124_s24  }
   0x4   : > { %s947_s30 = sadd.s32 1, %s876_s27   ;;  %s179_s8 = sadd.s32 1, %s872_s26 }
   0x5   : > { %s176_s9 = ssub.s32 %s876_s27, %s947_s30  ;;  %p189_p0 = scmp.ne.s32.totalorder %s872_s26, %s868_s25 }
   0x6   : > { %p177_p1 = scmp.eq.s32.totalorder %s176_s9, 0  ;;  %p190_p2 = scmp.eq.s32.totalorder %s943_s28, 2 }
   0x7   : > { %p195_p3 = scmp.ne.s32.totalorder %s868_s25, %s864_s24  ;;  %p196_p4 = scmp.eq.s32.totalorder %s672_s29, 2 }
   0x8   : > { %s958_s10 = scalar_select %p177_p1, %s872_s26, %s179_s8  }
   0x9   : > { %p960_p5 = por %p190_p2, %p189_p0  ;;  %p964_p6 = por %p196_p4, %p195_p3 }
   0xa   : > { %p675_p7 = scmp.ge.s32.totalorder %s876_s27, 1  ;;  %p241_p8 = scmp.lt.s32.totalorder %s876_s27, 4 }
   0xc   : > { %p242_p9 = pnand %p675_p7, %p241_p8 }
   0xd   : > { %s677_s13 = sshll.u32 (!%p242_p9), %s943_s28, 4  ;;  %s270_s20 = sand.u32 (!%p242_p9), 1, %s868_s25  }
   0xe   : > { %245 = sbr.rel (%p242_p9) target bundleno = 733 (0x2dd), region = 48  ;;  %p274_p10 = scmp.lt.s32.totalorder (!%p242_p9), %s677_s13, 47 }
   0xf   : > { %s676_s21 = sshll.u32 (!%p242_p9), %s270_s20, 2  ;;  %s881_s15 = smov (!%p242_p9), [#allocation2]  }
  0x10   : > { %s272_s23 = scalar_lea.vmem (!%p242_p9), [#allocation2], %s676_s21  ;;  %s820_s16 = sshll.u32 (!%p242_p9), %s881_s15, 4  ;;  %s821_s16 = int_to_ptr.vmem [resolvable:$false] %s820_s16 }
  0x11   : > { %s613_s29 = sshll.u32 (!%p242_p9), %s272_s23, 4  ;;  %s822_s17 = scalar_lea.vmem (!%p242_p9), %s821_s16, 128  ;;  %s1075_s29 = int_to_ptr.vmem [resolvable:$true] %s613_s29 }
  0x12   : > { %p823_p0 = scmp.lt.s32.totalorder (!%p242_p9), %s1075_s29, %s821_s16 }
  0x13   : > { %v811_v0 = vld [vmem:[%s1115_s1] sm:$0xff]   ;;  %vm333_vm0 = vcmask 64512   ;;  %v878_v1 = vmov 0   ;;  %v309_v2 = vld [vmem:[%s1116_s2 + $0x10] sm:$0xf]  ;;  %s1129_s13 = smov (!%p274_p10, %s677_s13), 47 }
  0x14   : > { %809 = vset.pattern.permute.xlu0 %v878_v1  ;;  %810 = vset.pattern.permute.xlu1 %v878_v1  ;;  %v308_v3 = vld [vmem:[%s1116_s2 + $0x8] sm:$0xff]  ;;  %v307_v4 = vld [vmem:[%s1116_s2] sm:$0xff]  ;;  %s678_s22 = sshll.u32 %s1129_s13, 3  ;;  %v424_v11 = vld [vmem:[%s1118_s4 + $0x10] sm:$0xff]  ;;  %v879_v44 = vmov 0.0   ;;  %vm880_vm1 = vmmov 0  }
  0x15   : > { %729 = vmatprep.mubr.msk.bf16.mxu0 %vm333_vm0, %v811_v0  ;;  %322 = vperm.xlu0 %809, %v309_v2   ;;  %v426_v5 = vld [vmem:[%s1118_s4 + $0x20] sm:$0xff]  ;;  %s990_s14 = scalar_lea.vmem %s1114_s0, %s678_s22  ;;  %v425_v13 = vld [vmem:[%s1118_s4 + $0x18] sm:$0xff]  ;;  %v423_v18 = vld [vmem:[%s1118_s4 + $0x8] sm:$0xff]  ;;  %vm475_vm2 = vcmask 1041408   ;;  %vm465_vm3 = vcmask 162816   ;;  %vm554_vm4 = vcmask 1043456  }
  0x16   : > { %317 = vperm.xlu1 %810, %v308_v3   ;;  %v294_v6 = vld [vmem:[%s990_s14 + $0x70] sm:$0xff]  ;;  %v295_v7 = vld [vmem:[%s990_s14 + $0x78] sm:$0xff]  ;;  %v292_v8 = vld [vmem:[%s990_s14 + $0x60] sm:$0xff]  ;;  %733 = vmatprep.subr.bf16.mxu1 %v879_v44  ;;  %vm550_vm5 = vcmask 326656   ;;  %s691_s22 = sshll.u32 %s943_s28, 6  ;;  %s600_s13 = scalar_lea.sflag [#allocation3], %s270_s20 }
  0x17   : > { %v303_v9 = vpack.c.bf16 %v295_v7, %v294_v6  ;;  %v293_v10 = vld [vmem:[%s990_s14 + $0x68] sm:$0xff]  ;;  %v422_v15 = vld [vmem:[%s1118_s4] sm:$0xff]  ;;  %v290_v16 = vld [vmem:[%s990_s14 + $0x50] sm:$0xff]  ;;  %737 = vmatprep.mubr.msk.bf16.mxu1 %vm880_vm1, %v879_v44  ;;  %s816_s28 = scalar_lea.vmem %s1075_s29, 64 }
  0x18   : > { %v302_v12 = vpack.c.bf16 %v293_v10, %v292_v8  ;;  %v291_v17 = vld [vmem:[%s990_s14 + $0x58] sm:$0xff]  ;;  %v544_v21 = vld [vmem:[%s1120_s6] sm:$0x7]  ;;  %v289_v23 = vld [vmem:[%s990_s14 + $0x48] sm:$0xff]  ;;  %p817_p11 = scmp.ne.s32.totalorder %s1075_s29, %s816_s28  ;;  %p824_p1 = scmp.lt.s32.totalorder %s822_s17, %s816_s28 }
  0x19   : > { %312 = vperm.xlu0 %809, %v307_v4   ;;  %759 = vmatprep.subr.msk.bf16.mxu0 %vm333_vm0, %v303_v9  ;;  %v362_v14 = vsel %vm333_vm0, %v303_v9, 0  ;;  %v301_v20 = vpack.c.bf16 %v291_v17, %v290_v16  ;;  %v288_v22 = vld [vmem:[%s990_s14 + $0x40] sm:$0xff]  ;;  %v286_v26 = vld [vmem:[%s990_s14 + $0x30] sm:$0xff]  ;;  %v287_v27 = vld [vmem:[%s990_s14 + $0x38] sm:$0xff] }
  0x1a   : > { %449 = vperm.xlu1 %810, %v426_v5   ;;  %714 = vmatpush3.bf16.xpose.msra.mxu0 %v362_v14  ;;  %v359_v19 = vsel %vm333_vm0, %v302_v12, 0  ;;  %v300_v25 = vpack.c.bf16 %v289_v23, %v288_v22  ;;  %v299_v29 = vpack.c.bf16 %v287_v27, %v286_v26  ;;  %v284_v30 = vld [vmem:[%s990_s14 + $0x20] sm:$0xff]  ;;  %v285_v31 = vld [vmem:[%s990_s14 + $0x28] sm:$0xff]  ;;  %v282_v34 = vld [vmem:[%s990_s14 + $0x10] sm:$0xff]  ;;  %p818_p12 = pnand %p817_p11, %p960_p5  ;;  %p825_p2 = por %p824_p1, %p823_p0 }
  0x1b   : > { %760 = vmatprep.subr.msk.bf16.mxu0 %vm333_vm0, %v302_v12  ;;  %v356_v24 = vsel %vm333_vm0, %v301_v20, 0  ;;  %v298_v33 = vpack.c.bf16 %v285_v31, %v284_v30  ;;  %v283_v35 = vld [vmem:[%s990_s14 + $0x18] sm:$0xff]  ;;  %v280_v38 = vld [vmem:[%s990_s14] sm:$0xff]  ;;  %v281_v39 = vld [vmem:[%s990_s14 + $0x8] sm:$0xff]  ;;  %s1073_s14 = scalar_lea.hbm %s1121_s7, %s691_s22 }
  0x1c   : > { %v353_v28 = vsel %vm333_vm0, %v300_v25, 0  ;;  %v350_v32 = vsel %vm333_vm0, %v299_v29, 0  ;;  %v297_v37 = vpack.c.bf16 %v283_v35, %v282_v34  ;;  %v296_v41 = vpack.c.bf16 %v281_v39, %v280_v38  ;;  %v812_v43 = vld [vmem:[%s1115_s1 + $0x8] ss:$0 sps:$4 sm:$0x33]   ;;  %v813_v61 = vld [vmem:[%s1117_s3] sm:$0xff]   ;;  %p819_p13 = pneg %p818_p12 }
  0x1d   : > { %439 = vperm.xlu0 %809, %v424_v11   ;;  %v347_v36 = vsel %vm333_vm0, %v298_v33, 0  ;;  %v814_v62 = vld [vmem:[%s1117_s3 + $0x8] sm:$0xff]   ;;  %v815_v63 = vld [vmem:[%s1117_s3 + $0x10] ss:$0 sps:$4 sm:$0xff]   ;;  %v540_v31 = vld [vmem:[%s1119_s5] sm:$0x3] }
  0x1e   : > { %444 = vperm.xlu1 %810, %v425_v13   ;;  %v344_v40 = vsel %vm333_vm0, %v297_v37, 0  ;;  %v341_v42 = vsel %vm333_vm0, %v296_v41, 0  ;;  %p826_p3 = pnand %p825_p2, %p819_p13 }
  0x21   : > { %429 = vperm.xlu0 %809, %v422_v15  }
  0x22   : > { %434 = vperm.xlu1 %810, %v423_v18   ;;  %716 = vmatpush3.bf16.xpose.msra.mxu0 %v359_v19 }
  0x23   : > { %761 = vmatprep.subr.msk.bf16.mxu0 %vm333_vm0, %v301_v20 }
  0x25   : > { %547 = vperm.xlu0 %809, %v544_v21  }
  0x2a   : > { %718 = vmatpush3.bf16.xpose.msra.mxu0 %v356_v24 }
  0x2b   : > { %762 = vmatprep.subr.msk.bf16.mxu0 %vm333_vm0, %v300_v25 }
  0x32   : > { %720 = vmatpush3.bf16.xpose.msra.mxu0 %v353_v28 }
  0x33   : > { %763 = vmatprep.subr.msk.bf16.mxu0 %vm333_vm0, %v299_v29 }
  0x3a   : > { %722 = vmatpush3.bf16.xpose.msra.mxu0 %v350_v32 }
  0x3b   : > { %764 = vmatprep.subr.msk.bf16.mxu0 %vm333_vm0, %v298_v33 }
  0x42   : > { %724 = vmatpush3.bf16.xpose.msra.mxu0 %v347_v36 }
  0x43   : > { %765 = vmatprep.subr.msk.bf16.mxu0 %vm333_vm0, %v297_v37 }
  0x4a   : > { %726 = vmatpush3.bf16.xpose.msra.mxu0 %v344_v40 }
  0x4b   : > { %766 = vmatprep.subr.msk.bf16.mxu0 %vm333_vm0, %v296_v41 }
  0x52   : > { %728 = vmatpush3.bf16.xpose.msra.mxu0 %v341_v42 }
  0x59   : > { %730 = vmatmul.mubr.msk.bf16.vlgmr.msra.gmra.mxu0 %vm333_vm0, %v812_v43 }
  0x90   : > { %v323_v45 = vpop.permute.xlu0 %322 }
  0x91   : > { %v318_v54 = vpop.permute.xlu1 %317 }
  0x94   : > { %v313_v50 = vpop.permute.xlu0 %312 }
  0x95   : > { %v450_v5 = vpop.permute.xlu1 %449 }
  0x98   : > { %v440_v11 = vpop.permute.xlu0 %439 }
  0x99   : > { %v445_v9 = vpop.permute.xlu1 %444 }
  0x9c   : > { %v430_v23 = vpop.permute.xlu0 %429 }
  0x9d   : > { %v435_v18 = vpop.permute.xlu1 %434 }
  0xa0   : > { %v548_v32 = vpop.permute.xlu0 %547 }
 0x119   : > { %v731_v46 = vpop.f32.mrf.mxu0 }
 0x11a   : > { %v407_v47 = vadd.f32 %v731_v46, %v323_v45 }
 0x11b   : > { %v398_v48 = vpop.f32.mrf.mxu0 }
 0x11c   : > { %v414_v49 = vmax.f32 %v407_v47, 0.0  ;;  %v399_v53 = vadd.f32 %v398_v48, %v313_v50 }
 0x11d   : > { %v732_v51 = vpop.f32.mrf.mxu0 }
 0x11e   : > { %v421_v52 = vpack.c.bf16 %v414_v49, %v414_v49  ;;  %v412_v58 = vmax.f32 %v399_v53, 0.0 }
 0x11f   : > { %v401_v55 = vpop.f32.mrf.mxu0 }
 0x120   : > { %v402_v56 = vadd.f32 %v401_v55, %v318_v54  ;;  %v477_v57 = vsel %vm475_vm2, %v421_v52, 0 }
 0x121   : > { %734 = vmatpush3.bf16.msra.mxu1 %v477_v57 }
 0x122   : > { %v413_v59 = vmax.f32 %v402_v56, 0.0  ;;  %735 = vmatprep.subr.bf16.mxu1 %v879_v44 }
 0x124   : > { %v420_v60 = vpack.c.bf16 %v413_v59, %v412_v58 }
 0x126   : > { %736 = vmatpush3.bf16.msra.mxu1 %v420_v60 }
 0x127   : > { %749 = vmatprep.subr.bf16.mxu1 %v879_v44 }
 0x129   : > { %738 = vmatmul.mubr.msk.bf16.vlgmr.msra.gmra.mxu1 %vm465_vm3, %v813_v61 }
 0x12a   : > { %741 = vmatprep.mubr.msk.bf16.mxu1 %vm880_vm1, %v879_v44 }
 0x131   : > { %742 = vmatmul.mubr.msk.bf16.gmra.mxu1 %vm465_vm3, %v814_v62 }
 0x132   : > { %745 = vmatprep.mubr.msk.bf16.mxu1 %vm880_vm1, %v879_v44 }
 0x139   : > { %746 = vmatmul.mubr.msk.bf16.gmra.mxu1 %vm465_vm3, %v815_v63 }
 0x13a   : > { %755 = vmatprep.mubr.msk.bf16.mxu1 %vm880_vm1, %v879_v44 }
 0x1e9   : > { %v513_v0 = vpop.f32.mrf.mxu1 }
 0x1ea   : > { %v514_v25 = vadd.f32 %v513_v0, %v430_v23 }
 0x1eb   : > { %v739_v1 = vpop.f32.mrf.mxu1 }
 0x1ec   : > { %v535_v29 = vmax.f32 %v514_v25, 0.0 }
 0x1ed   : > { %v516_v2 = vpop.f32.mrf.mxu1 }
 0x1ee   : > { %v517_v20 = vadd.f32 %v516_v2, %v435_v18 }
 0x1ef   : > { %v740_v3 = vpop.f32.mrf.mxu1 }
 0x1f0   : > { %v536_v27 = vmax.f32 %v517_v20, 0.0 }
 0x1f1   : > { %v521_v4 = vpop.f32.mrf.mxu1 }
 0x1f2   : > { %v522_v16 = vadd.f32 %v521_v4, %v440_v11  ;;  %v541_v30 = vpack.c.bf16 %v536_v27, %v535_v29 }
 0x1f3   : > { %v743_v6 = vpop.f32.mrf.mxu1 }
 0x1f4   : > { %v537_v26 = vmax.f32 %v522_v16, 0.0 }
 0x1f5   : > { %v524_v7 = vpop.f32.mrf.mxu1 }
 0x1f6   : > { %v525_v13 = vadd.f32 %v524_v7, %v445_v9 }
 0x1f7   : > { %v744_v8 = vpop.f32.mrf.mxu1 }
 0x1f8   : > { %v538_v21 = vmax.f32 %v525_v13, 0.0 }
 0x1f9   : > { %v529_v10 = vpop.f32.mrf.mxu1 }
 0x1fa   : > { %v530_v12 = vadd.f32 %v529_v10, %v450_v5  ;;  %v542_v28 = vpack.c.bf16 %v538_v21, %v537_v26 }
 0x1fb   : > { %v747_v14 = vpop.f32.mrf.mxu1 }
 0x1fc   : > { %v539_v15 = vmax.f32 %v530_v12, 0.0 }
 0x1fd   : > { %v532_v17 = vpop.f32.mrf.mxu1 }
 0x1fe   : > { %v543_v19 = vpack.c.bf16 %v539_v15, %v539_v15 }
 0x1ff   : > { %v748_v22 = vpop.f32.mrf.mxu1 }
 0x200   : > { %v556_v24 = vsel %vm554_vm4, %v543_v19, 0 }
 0x201   : > { %750 = vmatpush3.bf16.msra.mxu1 %v556_v24 }
 0x202   : > { %751 = vmatprep.subr.bf16.mxu1 %v879_v44 }
 0x205   : > { %752 = vmatpush3.bf16.msra.mxu1 %v542_v28 }
 0x206   : > { %753 = vmatprep.subr.bf16.mxu1 %v879_v44 }
 0x209   : > { %754 = vmatpush3.bf16.msra.mxu1 %v541_v30 }
 0x20c   : > { %756 = vmatmul.mubr.msk.bf16.vlgmr.msra.gmra.mxu1 %vm550_vm5, %v540_v31 }
 0x2cc   : > { %v592_v33 = vpop.f32.mrf.mxu1 }
 0x2cd   : > { %v593_v34 = vadd.f32 %v592_v33, %v548_v32 }
 0x2ce   : > { %v757_v35 = vpop.f32.mrf.mxu1 }
 0x2cf   : > { %598 = vst [vmem:[%s272_s23] sm:$0x7] %v593_v34 }
 0x2d0   : > { %v595_v36 = vpop.f32.mrf.mxu1 }
 0x2d1   : > { %829 = shalt.err (!%p826_p3)
}
 0x2d2   : > { %s830_s18 = scalar_lea.hbm %s1073_s14, 64  ;;  %s834_s21 = scalar_lea.hbm %s1121_s7, 192 }
 0x2d3   : > { %p831_p4 = scmp.ne.s32.totalorder %s1073_s14, %s830_s18  ;;  %p835_p9 = scmp.lt.s32.totalorder %s1073_s14, %s1121_s7 }
 0x2d4   : > { %p836_p10 = scmp.lt.s32.totalorder %s834_s21, %s830_s18 }
 0x2d5   : > { %p832_p7 = pnand %p831_p4, %p960_p5 }
 0x2d6   : > { %p837_p11 = por %p836_p10, %p835_p9 }
 0x2d7   : > { %p833_p8 = pneg %p832_p7 }
 0x2d9   : > { %p838_p12 = pnand %p837_p11, %p833_p8 }
 0x2db   : > { %841 = shalt.err (!%p838_p12)
}
 0x2dc   : > { %767 = dma.vmem_to_hbm [thread:$0]  (%p960_p5), %s1075_s29, 64, %s1073_s14, %s600_s13   ;;  %v758_v37 = vpop.f32.mrf.mxu1 }
 0x2dd PF: > { %p773_p13 = scmp.ge.s32.totalorder %s876_s27, 2  ;;  %s625_s8 = sand.u32 1, %s864_s24  }
 0x2de   : > { %s626_s9 = scalar_lea.sflag [#allocation3], %s625_s8 }
 0x2df   : > { %p770_p0 = pnand %p773_p13, %p964_p6 }
 0x2e1   : > { %p771_p1 = pneg %p770_p0 }
 0x2e3   : > { %859 = dma.done.wait (%p771_p1), %s626_s9, 64  }
 0x2e4   : > { %861 = vsyncadd (%p771_p1), %s626_s9, 4294967232  ;;  %p17_p2 = scmp.ge.s32.totalorder %s947_s30, 5   ;;  %s1124_s24 = smov %s868_s25 }
 0x2e5   : > { %s1125_s25 = smov %s872_s26  ;;  %s1126_s26 = smov %s958_s10 }
 0x2e6   : > { %s1127_s27 = smov %s947_s30  ;;  %19 = sbr.rel (!%p17_p2) target bundleno = 3 (0x3), region = 83 }
 0x2eb   :  { %631 = vsyncpa [#allocation3], 1 }
 0x2ec   :  { %633 = vsyncpa [#allocation3 + $0x1], 1 }

</bundles_post_ra>
